<compile_context>
chip_gen: v6e
topology: v6e:2x2x1
jax: 0.10.0
libtpu: 0.0.40
codegen_flags: <defaults>
</compile_context>

<pallas_src>
import jax
import jax.numpy as jnp
from jax.experimental import pallas as pl
from jax.experimental.pallas import tpu as pltpu


def _round_up(x: int, m: int) -> int:
    return (x + m - 1) // m * m


_TM_LADDER = (2048, 1024, 512, 384, 256, 128, 64, 32, 16, 8)
_TN_LADDER = (512, 384, 256, 128)
_VMEM_BUDGET = 14 * 1024 * 1024  # stay under v5e's 16 MiB scoped-VMEM default


def fused_mlp_kernel(x1_ref, x2_ref, w1_ref, w2_ref, b_ref, o_ref):
    # Two MXU contractions into one f32 accumulator (equivalent to the fused
    # [x1|x2] @ [[w1];[w2]] GEMM, but without materializing the concat).
    acc = jnp.dot(x1_ref[...], w1_ref[...], preferred_element_type=jnp.float32)
    acc = acc + jnp.dot(x2_ref[...], w2_ref[...],
                        preferred_element_type=jnp.float32)
    # Pre-summed f32 bias (1, tn) broadcasts over the batch tile; ReLU epilogue.
    o_ref[...] = jnp.maximum(acc + b_ref[...], 0.0).astype(o_ref.dtype)


def prepare_params(w1, b1, w2, b2, *, param_dtype=jnp.bfloat16):
    """One-time parameter prep (do NOT redo per forward call).

    w1: [I, H], b1: [H], w2: [H, H], b2: [H]  (weights stored [in, out]).
    Pads the out-feature axis to a multiple of 128 (lane-dense output store),
    folds b1 + b2 (valid since the two linear outputs are summed before ReLU)
    and casts weights to bf16 for the MXU.
    """
    I, H = w1.shape
    H2 = w2.shape[0]
    H_pad = _round_up(H, 128)
    w1_p = jnp.zeros((I, H_pad), param_dtype).at[:, :H].set(w1.astype(param_dtype))
    w2_p = jnp.zeros((H2, H_pad), param_dtype).at[:, :H].set(w2.astype(param_dtype))
    b_p = jnp.zeros((1, H_pad), jnp.float32).at[:, :H].set(
        (b1 + b2).astype(jnp.float32).reshape(1, H))
    return {"w1": w1_p, "w2": w2_p, "b": b_p, "hidden": H}


def _pick_tiles(B_pad, H_pad, I, H2, in_itemsize, out_itemsize,
                tm_max=1024, tn_max=512):
    """Divisor-ladder tile selection under a VMEM budget (double-buffered)."""
    def vmem_bytes(tm, tn):
        return (2 * (tm * I + tm * H2 + I * tn + H2 * tn) * in_itemsize
                + 2 * tn * 4                       # bias (f32)
                + 2 * tm * tn * out_itemsize)      # output tile

    tn = next((c for c in _TN_LADDER
               if c <= tn_max and c <= H_pad and H_pad % c == 0), H_pad)

    tm = 8  # always divides B_pad (which is a multiple of 8)
    for c in _TM_LADDER:
        if (c <= tm_max and c <= B_pad and B_pad % c == 0
                and vmem_bytes(c, tn) <= _VMEM_BUDGET):
            tm = c
            break

    # Megacore: make sure at least one parallel axis has >= 2 blocks when the
    # shapes allow it (otherwise only one of v7x's two TensorCores runs).
    if (B_pad // tm) * (H_pad // tn) == 1:
        if H_pad % 256 == 0:
            tn = H_pad // 2
        elif B_pad % 16 == 0 and B_pad >= 16:
            tm = B_pad // 2
    return tm, tn


def mlp_forward(x1, x2, params, *, act_dtype=jnp.bfloat16):
    """h = ReLU(x1 @ w1 + b1 + x2 @ w2 + b2) using pre-prepared params."""
    B, I = x1.shape
    H2 = x2.shape[1]
    w1_p, w2_p, b_p = params["w1"], params["w2"], params["b"]
    H = params["hidden"]
    H_pad = w1_p.shape[1]
    out_dtype = x1.dtype

    # Batch padded only to the sublane quantum (to 128-multiples once large so
    # a big tm from the ladder divides it) — bounded padding waste.
    B_pad = _round_up(B, 8)
    if B_pad > 128:
        B_pad = _round_up(B_pad, 128)

    in_itemsize = jnp.dtype(act_dtype).itemsize
    out_itemsize = jnp.dtype(out_dtype).itemsize
    tm, tn = _pick_tiles(B_pad, H_pad, I, H2, in_itemsize, out_itemsize)

    # Only the (cheap) activations are padded/cast per call; no K concat/pad.
    x1_p = jnp.zeros((B_pad, I), act_dtype).at[:B, :].set(x1.astype(act_dtype))
    x2_p = jnp.zeros((B_pad, H2), act_dtype).at[:B, :].set(x2.astype(act_dtype))

    grid = (B_pad // tm, H_pad // tn)

    flops = 2 * B_pad * (I + H2) * H_pad
    bytes_accessed = ((x1_p.size + x2_p.size) * in_itemsize
                      + (w1_p.size + w2_p.size) * jnp.dtype(w1_p.dtype).itemsize
                      + b_p.size * 4
                      + B_pad * H_pad * out_itemsize)

    out_p = pl.pallas_call(
        fused_mlp_kernel,
        out_shape=jax.ShapeDtypeStruct((B_pad, H_pad), out_dtype),
        grid=grid,
        in_specs=[
            pl.BlockSpec((tm, I), lambda i, j: (i, 0)),    # x1 tile (full I)
            pl.BlockSpec((tm, H2), lambda i, j: (i, 0)),   # x2 tile (full H2)
            pl.BlockSpec((I, tn), lambda i, j: (0, j)),    # w1 panel (full I)
            pl.BlockSpec((H2, tn), lambda i, j: (0, j)),   # w2 panel (full H2)
            pl.BlockSpec((1, tn), lambda i, j: (0, j)),    # fused bias
        ],
        out_specs=pl.BlockSpec((tm, tn), lambda i, j: (i, j)),
        compiler_params=pltpu.CompilerParams(
            dimension_semantics=("parallel", "parallel"),
            vmem_limit_bytes=32 * 1024 * 1024,
        ),
        cost_estimate=pl.CostEstimate(
            flops=flops, transcendentals=0, bytes_accessed=bytes_accessed),
    )(x1_p, x2_p, w1_p, w2_p, b_p)

    return out_p[:B, :H]


def init_params(key, input_size, hidden_size):
    """Deterministic init mirroring nn.Linear parameter shapes.

    PyTorch stores Linear weights as [out, in]; we keep them transposed
    ([in, out]) so the kernel does x @ W.
    """
    k1, k2, k3, k4 = jax.random.split(key, 4)
    bound1 = 1.0 / (input_size ** 0.5)
    bound2 = 1.0 / (hidden_size ** 0.5)
    w1 = jax.random.uniform(k1, (input_size, hidden_size), jnp.float32,
                            -bound1, bound1)
    b1 = jax.random.uniform(k2, (hidden_size,), jnp.float32, -bound1, bound1)
    w2 = jax.random.uniform(k3, (hidden_size, hidden_size), jnp.float32,
                            -bound2, bound2)
    b2 = jax.random.uniform(k4, (hidden_size,), jnp.float32, -bound2, bound2)
    return w1, b1, w2, b2


if __name__ == "__main__":
    key = jax.random.PRNGKey(0)
    k_x1, k_x2, k_p = jax.random.split(key, 3)

    batch = 8
    input_size = 16
    hidden_size = 32

    x1 = jax.random.normal(k_x1, (batch, input_size), jnp.float32)
    x2 = jax.random.normal(k_x2, (batch, hidden_size), jnp.float32)
    w1, b1, w2, b2 = init_params(k_p, input_size, hidden_size)

    # One-time parameter prep (reused across every forward call).
    params = prepare_params(w1, b1, w2, b2)

    fwd = jax.jit(lambda a, b: mlp_forward(a, b, params))
    out = jax.block_until_ready(fwd(x1, x2))
    assert out.shape == (batch, hidden_size)

    # Reference with the SAME operand precision (bf16 operands, f32 accumulate).
    ref_bf16 = jnp.maximum(
        jnp.dot(x1.astype(jnp.bfloat16), w1.astype(jnp.bfloat16),
                preferred_element_type=jnp.float32)
        + jnp.dot(x2.astype(jnp.bfloat16), w2.astype(jnp.bfloat16),
                  preferred_element_type=jnp.float32)
        + (b1 + b2), 0.0)
    assert jnp.allclose(out, ref_bf16, atol=1e-4, rtol=1e-4), \
        "mismatch vs bf16-operand reference"

    # Loose sanity check against the full-f32 PyTorch-semantics reference
    # (difference is only bf16 operand rounding).
    ref_f32 = jnp.maximum(x1 @ w1 + b1 + x2 @ w2 + b2, 0.0)
    assert jnp.allclose(out, ref_f32, atol=5e-2, rtol=5e-2), \
        "mismatch vs f32 reference"

    print("KERNEL_OK")
</pallas_src>

<mosaic_0001>
module attributes {stable_mosaic.version = 11 : i64} {
  func.func @fused_mlp_kernel(%arg0: i32, %arg1: i32, %arg2: memref<8x16xbf16, #tpu.memory_space<vmem>>, %arg3: memref<8x32xbf16, #tpu.memory_space<vmem>>, %arg4: memref<16x128xbf16, #tpu.memory_space<vmem>>, %arg5: memref<32x128xbf16, #tpu.memory_space<vmem>>, %arg6: memref<1x128xf32, #tpu.memory_space<vmem>>, %arg7: memref<8x128xf32, #tpu.memory_space<vmem>>) attributes {dimension_semantics = [#tpu.dimension_semantics<parallel>, #tpu.dimension_semantics<parallel>], iteration_bounds = array<i64: 1, 1>, scalar_prefetch = 0 : i64, scratch_operands = 0 : i64, tpu.core_type = #tpu.core_type<tc>, window_params = [{transform_indices = @transform_0, window_bounds = array<i64: 8, 16>}, {transform_indices = @transform_1, window_bounds = array<i64: 8, 32>}, {transform_indices = @transform_2, window_bounds = array<i64: 16, 128>}, {transform_indices = @transform_3, window_bounds = array<i64: 32, 128>}, {transform_indices = @transform_4, window_bounds = array<i64: 1, 128>}, {transform_indices = @transform_5, window_bounds = array<i64: 8, 128>}]} {
    %c0 = arith.constant 0 : index
    %c0_0 = arith.constant 0 : index
    %0 = vector.load %arg2[%c0, %c0_0] : memref<8x16xbf16, #tpu.memory_space<vmem>>, vector<8x16xbf16>
    %c0_1 = arith.constant 0 : index
    %c0_2 = arith.constant 0 : index
    %1 = vector.load %arg4[%c0_1, %c0_2] : memref<16x128xbf16, #tpu.memory_space<vmem>>, vector<16x128xbf16>
    %cst = arith.constant dense<0.000000e+00> : vector<8x128xf32>
    %2 = tpu.matmul %0, %1, %cst {dimension_numbers = #tpu.dot_dimension_numbers<[1], [0], [0], [1], [0, 0, 1, 1], [], []>} : vector<8x16xbf16>, vector<16x128xbf16>, vector<8x128xf32> -> vector<8x128xf32>
    %c0_3 = arith.constant 0 : index
    %c0_4 = arith.constant 0 : index
    %3 = vector.load %arg3[%c0_3, %c0_4] : memref<8x32xbf16, #tpu.memory_space<vmem>>, vector<8x32xbf16>
    %c0_5 = arith.constant 0 : index
    %c0_6 = arith.constant 0 : index
    %4 = vector.load %arg5[%c0_5, %c0_6] : memref<32x128xbf16, #tpu.memory_space<vmem>>, vector<32x128xbf16>
    %cst_7 = arith.constant dense<0.000000e+00> : vector<8x128xf32>
    %5 = tpu.matmul %3, %4, %cst_7 {dimension_numbers = #tpu.dot_dimension_numbers<[1], [0], [0], [1], [0, 0, 1, 1], [], []>} : vector<8x32xbf16>, vector<32x128xbf16>, vector<8x128xf32> -> vector<8x128xf32>
    %6 = arith.addf %2, %5 : vector<8x128xf32>
    %c0_8 = arith.constant 0 : index
    %c0_9 = arith.constant 0 : index
    %7 = vector.load %arg6[%c0_8, %c0_9] : memref<1x128xf32, #tpu.memory_space<vmem>>, vector<1x128xf32>
    %8 = vector.broadcast %7 : vector<1x128xf32> to vector<8x128xf32>
    %9 = arith.addf %6, %8 : vector<8x128xf32>
    %cst_10 = arith.constant 0.000000e+00 : f32
    %10 = vector.broadcast %cst_10 : f32 to vector<8x128xf32>
    %11 = arith.maximumf %9, %10 : vector<8x128xf32>
    %c0_11 = arith.constant 0 : index
    %c0_12 = arith.constant 0 : index
    %12 = vector.load %arg7[%c0_11, %c0_12] : memref<8x128xf32, #tpu.memory_space<vmem>>, vector<8x128xf32>
    tpu.vector_store %arg7[%c0_11, %c0_12], %11 {strides = array<i32>} : memref<8x128xf32, #tpu.memory_space<vmem>>, vector<8x128xf32>,
    return
  }
  func.func @transform_0(%arg0: i32, %arg1: i32) -> (i32, i32) {
    %c0_i32 = arith.constant 0 : i32
    %c0_i32_0 = arith.constant 0 : i32
    return %arg0, %c0_i32 : i32, i32
  }
  func.func @transform_1(%arg0: i32, %arg1: i32) -> (i32, i32) {
    %c0_i32 = arith.constant 0 : i32
    %c0_i32_0 = arith.constant 0 : i32
    return %arg0, %c0_i32 : i32, i32
  }
  func.func @transform_2(%arg0: i32, %arg1: i32) -> (i32, i32) {
    %c0_i32 = arith.constant 0 : i32
    %c0_i32_0 = arith.constant 0 : i32
    return %c0_i32, %arg1 : i32, i32
  }
  func.func @transform_3(%arg0: i32, %arg1: i32) -> (i32, i32) {
    %c0_i32 = arith.constant 0 : i32
    %c0_i32_0 = arith.constant 0 : i32
    return %c0_i32, %arg1 : i32, i32
  }
  func.func @transform_4(%arg0: i32, %arg1: i32) -> (i32, i32) {
    %c0_i32 = arith.constant 0 : i32
    %c0_i32_0 = arith.constant 0 : i32
    return %c0_i32, %arg1 : i32, i32
  }
  func.func @transform_5(%arg0: i32, %arg1: i32) -> (i32, i32) {
    %c0_i32 = arith.constant 0 : i32
    return %arg0, %arg1 : i32, i32
  }
}

</mosaic_0001>

<bundles_post_ra>
// kernel: _lambda_.1
= control target key start
LH: loop header
LB: loop body
LE: loop exit
PB: predicated region body
PF: predicated region fallthrough
CT: control target
= control target key end

     0   :  { %v213_v1 = vmov 0.0   ;;  %vm214_vm0 = vmmov 0   ;;  %vm92_vm1 = vcmask 130048   ;;  %s267_s0 = inlined_call_operand.vmem [shape: bf16[8,16], index: 0, kind: input, shape index: {}]   ;;  %s268_s1 = inlined_call_operand.vmem [shape: bf16[8,32], index: 1, kind: input, shape index: {}]   ;;  %s269_s2 = inlined_call_operand.vmem [shape: bf16[16,128], index: 2, kind: input, shape index: {}]   ;;  %s270_s3 = inlined_call_operand.vmem [shape: bf16[32,128], index: 3, kind: input, shape index: {}]   ;;  %s271_s4 = inlined_call_operand.vmem [shape: f32[1,128], index: 4, kind: input, shape index: {}]   ;;  %s272_s5 = inlined_call_operand.hbm [shape: f32[8,128], index: 5, kind: output, shape index: {}]  }
   0x1   :  { %v188_v0 = vld [vmem:[%s270_s3 + $0x8] sm:$0xff]   ;;  %171 = vmatprep.subr.bf16.mxu0 %v213_v1  ;;  %179 = vmatprep.subr.bf16.mxu1 %v213_v1  ;;  %v189_v2 = vld [vmem:[%s269_s2] sm:$0xff]  }
   0x2   :  { %172 = vmatpush3.bf16.msra.mxu0 %v188_v0  ;;  %181 = vmatprep.mubr.msk.bf16.mxu1 %vm214_vm0, %v213_v1  ;;  %v190_v3 = vld [vmem:[%s270_s3] sm:$0xff]  }
   0x3   :  { %180 = vmatpush3.bf16.msra.mxu1 %v189_v2  ;;  %173 = vmatprep.subr.bf16.mxu0 %v213_v1  ;;  %v22_v4 = vld [vmem:[%s267_s0] sm:$0xf] }
   0x4   :  { %175 = vmatprep.mubr.msk.bf16.mxu0 %vm214_vm0, %v213_v1 }
   0x5   :  { %10 = vsyncpa [#allocation3], 0  ;;  %v25_v5 = vld [vmem:[%s268_s1] sm:$0xf]  ;;  %vm42_vm2 = vcmask 261120   ;;  %s215_s0 = smov [#allocation2]  }
   0x6   :  { %182 = vmatmul.mubr.msk.bf16.vlgmr.msra.gmra.mxu1 %vm92_vm1, %v22_v4  ;;  %174 = vmatpush3.bf16.msra.mxu0 %v190_v3  ;;  %v165_v9 = vld [vmem:[%s271_s4] ss:$0 sm:$0xff]  ;;  %s152_s28 = sshll.u32 %s215_s0, 4  ;;  %s153_s28 = int_to_ptr.vmem [resolvable:$true] %s152_s28 }
   0x7   :  { %s191_s1 = scalar_lea.vmem %s153_s28, 128  ;;  %p196_p1 = scmp.lt.s32.totalorder %s153_s28, %s153_s28 }
   0x8   :  { %p192_p0 = scmp.ne.s32.totalorder %s153_s28, %s191_s1  ;;  %p197_p2 = scmp.lt.s32.totalorder %s191_s1, %s191_s1 }
   0x9   :  { %176 = vmatmul.mubr.msk.bf16.vlgmr.msra.gmra.mxu0 %vm42_vm2, %v25_v5 }
   0xa   :  { %p198_p3 = por %p197_p2, %p196_p1 }
   0xc   :  { %p199_p4 = pnand %p198_p3, %p192_p0 }
  0xc6   :  { %v130_v6 = vpop.f32.mrf.mxu1 }
  0xc8   :  { %v183_v7 = vpop.f32.mrf.mxu1 }
  0xc9   :  { %v80_v8 = vpop.f32.mrf.mxu0 }
  0xca   :  { %v131_v10 = vadd.f32 %v130_v6, %v80_v8  ;;  %v133_v11 = vpop.f32.mrf.mxu1 }
  0xcb   :  { %v177_v12 = vpop.f32.mrf.mxu0 }
  0xcc   :  { %v143_v13 = vadd.f32 %v165_v9, %v131_v10  ;;  %v184_v14 = vpop.f32.mrf.mxu1 }
  0xcd   :  { %v83_v15 = vpop.f32.mrf.mxu0 }
  0xce   :  { %v144_v16 = vmax.f32 %v143_v13, 0.0 }
  0xcf   :  { %v178_v17 = vpop.f32.mrf.mxu0 }
  0xd0   :  { %145 = vst [vmem:[#allocation2] sm:$0xff] %v144_v16 }
  0xd1   :  { %202 = shalt.err (!%p199_p4)
}
  0xd2   :  { %155 = dma.vmem_to_hbm [thread:$0]  %s153_s28, 128, %s272_s5, [#allocation3]  }
  0xd3   :  { %211 = dma.done.wait [#allocation3], 128  }
  0xd4   :  { %212 = vsyncadd [#allocation3], 4294967168 }
  0xd5   :  { %159 = vsyncpa [#allocation3], 1 }

</bundles_post_ra>
